<compile_context>
chip_gen: v5e
topology: v5e:2x2
jax: 0.10.0
libtpu: 0.0.40
codegen_flags: <defaults>
</compile_context>

<pallas_src>
import functools

import jax
import jax.numpy as jnp
from jax.experimental import pallas as pl
from jax.experimental.pallas import tpu as pltpu


_REL_VALUES = (0.1, 0.2, 0.3, 0.4, 0.5, 0.6)  # left,right,up,down,another1,another2


def _round_up(x, m):
    return (x + m - 1) // m * m


def _gcn_fused_kernel(adj_ref, x_ref, *rest, num_layers):
    """Whole GCN forward (all layers) in one kernel invocation."""
    w_refs = rest[:num_layers]       # per-layer fused (7*Fin_p, Fout_p) weights
    out_ref = rest[num_layers]

    adj = adj_ref[...]

    # Relation masks: exact float32 equality, matching the PyTorch module.
    masks = [(adj == v).astype(jnp.float32) for v in _REL_VALUES]

    # denom = per-row total relation degree + 1.  One XLU row-reduction.
    mask_sum = masks[0]
    for m in masks[1:]:
        mask_sum = mask_sum + m
    denom = jnp.sum(mask_sum, axis=-1, keepdims=True) + 1.0
    inv_denom = 1.0 / denom          # once per forward over an (N,1) column

    h = x_ref[...]
    for l in range(num_layers):
        # Aggregation: m_j @ h  (einsum('kl,lz->kz', mask, h) in the module).
        # TODO(synk): for large N stack the 6 masks into one (6N,N)@(N,F) dot.
        aggs = [jnp.dot(m, h, preferred_element_type=jnp.float32) for m in masks]

        # Fused projection: one K = 7*F matmul instead of 7 K=F matmuls.
        feats = jnp.concatenate([h] + aggs, axis=-1)
        acc = jnp.dot(feats, w_refs[l][...], preferred_element_type=jnp.float32)

        if l != num_layers - 1:
            acc = acc * inv_denom
        h = jnp.maximum(acc, 0.0)
        # TODO(synk): nn.Dropout(0.3) between layers is stochastic; modeled in
        # eval mode (identity) here.

    out_ref[...] = h


def prepare_gcn_weights(layer_weights):
    """One-time weight prep (outside the hot path).

    layer_weights: list (per layer) of 7 PyTorch-layout (out_dim, in_dim)
    matrices, ordered (self, left, right, up, down, another1, another2).
    Returns one fused (7*in_p, out_p) matrix per layer: each weight is
    transposed to (in, out), zero-padded to multiples of 128, concatenated.
    """
    packed = []
    for ws in layer_weights:
        out_dim, in_dim = ws[0].shape
        in_p = _round_up(in_dim, 128)
        out_p = _round_up(out_dim, 128)
        blocks = []
        for w in ws:
            wt = jnp.asarray(w, jnp.float32).T                         # (in, out)
            wt = jnp.pad(wt, ((0, in_p - in_dim), (0, out_p - out_dim)))
            blocks.append(wt)
        packed.append(jnp.concatenate(blocks, axis=0))                 # (7*in_p, out_p)
    return packed


def gcn_forward(adj, x, packed_weights, out_dim):
    """Full multi-layer GCN forward in a single pallas_call."""
    n = adj.shape[0]
    f_in = x.shape[1]
    num_layers = len(packed_weights)
    f_in_p = packed_weights[0].shape[0] // 7
    hid_p = packed_weights[0].shape[1]

    n_p = _round_up(n, 8)
    adj_p = jnp.pad(jnp.asarray(adj, jnp.float32),
                    ((0, n_p - n), (0, n_p - n)))
    x_p = jnp.pad(jnp.asarray(x, jnp.float32),
                  ((0, n_p - n), (0, f_in_p - f_in)))

    kernel = functools.partial(_gcn_fused_kernel, num_layers=num_layers)
    full2d = lambda i: (0, 0)

    in_specs = [pl.BlockSpec((n_p, n_p), full2d),
                pl.BlockSpec((n_p, f_in_p), full2d)]
    for w in packed_weights:
        in_specs.append(pl.BlockSpec(w.shape, full2d))

    out = pl.pallas_call(
        kernel,
        out_shape=jax.ShapeDtypeStruct((n_p, hid_p), jnp.float32),
        grid=(1,),
        in_specs=in_specs,
        out_specs=pl.BlockSpec((n_p, hid_p), full2d),
        compiler_params=pltpu.CompilerParams(
            dimension_semantics=("arbitrary",)),
    )(adj_p, x_p, *packed_weights)

    return out[:n, :out_dim]


def _gcn_ref(adj, x, layer_weights):
    """Pure-JAX reference mirroring the PyTorch forward (eval mode)."""
    masks = [(adj == v).astype(jnp.float32) for v in _REL_VALUES]
    denom = sum(m.sum(-1, keepdims=True) for m in masks) + 1.0
    h = x
    num_layers = len(layer_weights)
    for l, ws in enumerate(layer_weights):
        acc = h @ ws[0].T
        for m, w in zip(masks, ws[1:]):
            acc = acc + (m @ h) @ w.T
        if l != num_layers - 1:
            acc = acc / denom
        h = jnp.maximum(acc, 0.0)
    return h


def _make_weights(key, input_size, hidden_size, num_layers):
    layer_weights = []
    for l in range(num_layers):
        in_dim = input_size if l == 0 else hidden_size
        ws = []
        for _ in range(7):  # self, left, right, up, down, another1, another2
            key, sub = jax.random.split(key)
            bound = 1.0 / jnp.sqrt(in_dim)
            ws.append(jax.random.uniform(sub, (hidden_size, in_dim),
                                         jnp.float32, -bound, bound))
        layer_weights.append(tuple(ws))
    return layer_weights


if __name__ == "__main__":
    N, INPUT_SIZE, HIDDEN_SIZE, NUM_LAYERS = 16, 32, 32, 2

    key = jax.random.PRNGKey(0)
    k_adj, k_x, k_w = jax.random.split(key, 3)

    # adj entries drawn exactly from {0.0, 0.1, ..., 0.6} so float == matches.
    vals = jnp.array([0.0, 0.1, 0.2, 0.3, 0.4, 0.5, 0.6], dtype=jnp.float32)
    idx = jax.random.randint(k_adj, (N, N), 0, 7)
    adj = vals[idx]

    x = jax.random.normal(k_x, (N, INPUT_SIZE), dtype=jnp.float32)
    layer_weights = _make_weights(k_w, INPUT_SIZE, HIDDEN_SIZE, NUM_LAYERS)

    packed_weights = prepare_gcn_weights(layer_weights)  # one-time prep

    out = gcn_forward(adj, x, packed_weights, HIDDEN_SIZE)
    out = jax.block_until_ready(out)

    ref = _gcn_ref(adj, x, layer_weights)
    if not jnp.allclose(out, ref, atol=1e-4, rtol=1e-4):
        raise AssertionError("Pallas GCN output mismatch vs JAX reference")

    print("KERNEL_OK")
</pallas_src>

<mosaic_0001>
module attributes {stable_mosaic.version = 11 : i64} {
  func.func @_gcn_fused_kernel(%arg0: i32, %arg1: memref<16x16xf32, #tpu.memory_space<vmem>>, %arg2: memref<16x128xf32, #tpu.memory_space<vmem>>, %arg3: memref<896x128xf32, #tpu.memory_space<vmem>>, %arg4: memref<896x128xf32, #tpu.memory_space<vmem>>, %arg5: memref<16x128xf32, #tpu.memory_space<vmem>>) attributes {dimension_semantics = [#tpu.dimension_semantics<arbitrary>], iteration_bounds = array<i64: 1>, scalar_prefetch = 0 : i64, scratch_operands = 0 : i64, tpu.core_type = #tpu.core_type<tc>, window_params = [{pipeline_mode = #tpu.pipeline_mode<synchronous>, transform_indices = @transform_0, window_bounds = array<i64: 16, 16>}, {pipeline_mode = #tpu.pipeline_mode<synchronous>, transform_indices = @transform_1, window_bounds = array<i64: 16, 128>}, {pipeline_mode = #tpu.pipeline_mode<synchronous>, transform_indices = @transform_2, window_bounds = array<i64: 896, 128>}, {pipeline_mode = #tpu.pipeline_mode<synchronous>, transform_indices = @transform_3, window_bounds = array<i64: 896, 128>}, {pipeline_mode = #tpu.pipeline_mode<synchronous>, transform_indices = @transform_4, window_bounds = array<i64: 16, 128>}]} {
    %c0 = arith.constant 0 : index
    %c0_0 = arith.constant 0 : index
    %0 = vector.load %arg1[%c0, %c0_0] : memref<16x16xf32, #tpu.memory_space<vmem>>, vector<16x16xf32>
    %cst = arith.constant 1.000000e-01 : f32
    %1 = vector.broadcast %cst : f32 to vector<16x16xf32>
    %2 = arith.cmpf oeq, %0, %1 : vector<16x16xf32>
    %3 = arith.extui %2 : vector<16x16xi1> to vector<16x16xi32>
    %4 = arith.sitofp %3 : vector<16x16xi32> to vector<16x16xf32>
    %cst_1 = arith.constant 2.000000e-01 : f32
    %5 = vector.broadcast %cst_1 : f32 to vector<16x16xf32>
    %6 = arith.cmpf oeq, %0, %5 : vector<16x16xf32>
    %7 = arith.extui %6 : vector<16x16xi1> to vector<16x16xi32>
    %8 = arith.sitofp %7 : vector<16x16xi32> to vector<16x16xf32>
    %cst_2 = arith.constant 3.000000e-01 : f32
    %9 = vector.broadcast %cst_2 : f32 to vector<16x16xf32>
    %10 = arith.cmpf oeq, %0, %9 : vector<16x16xf32>
    %11 = arith.extui %10 : vector<16x16xi1> to vector<16x16xi32>
    %12 = arith.sitofp %11 : vector<16x16xi32> to vector<16x16xf32>
    %cst_3 = arith.constant 4.000000e-01 : f32
    %13 = vector.broadcast %cst_3 : f32 to vector<16x16xf32>
    %14 = arith.cmpf oeq, %0, %13 : vector<16x16xf32>
    %15 = arith.extui %14 : vector<16x16xi1> to vector<16x16xi32>
    %16 = arith.sitofp %15 : vector<16x16xi32> to vector<16x16xf32>
    %cst_4 = arith.constant 5.000000e-01 : f32
    %17 = vector.broadcast %cst_4 : f32 to vector<16x16xf32>
    %18 = arith.cmpf oeq, %0, %17 : vector<16x16xf32>
    %19 = arith.extui %18 : vector<16x16xi1> to vector<16x16xi32>
    %20 = arith.sitofp %19 : vector<16x16xi32> to vector<16x16xf32>
    %cst_5 = arith.constant 6.000000e-01 : f32
    %21 = vector.broadcast %cst_5 : f32 to vector<16x16xf32>
    %22 = arith.cmpf oeq, %0, %21 : vector<16x16xf32>
    %23 = arith.extui %22 : vector<16x16xi1> to vector<16x16xi32>
    %24 = arith.sitofp %23 : vector<16x16xi32> to vector<16x16xf32>
    %25 = arith.addf %4, %8 : vector<16x16xf32>
    %26 = arith.addf %25, %12 : vector<16x16xf32>
    %27 = arith.addf %26, %16 : vector<16x16xf32>
    %28 = arith.addf %27, %20 : vector<16x16xf32>
    %29 = arith.addf %28, %24 : vector<16x16xf32>
    %cst_6 = arith.constant dense<0.000000e+00> : vector<16xf32>
    %30 = vector.multi_reduction <add>, %29, %cst_6 [1] : vector<16x16xf32> to vector<16xf32>
    %31 = vector.shape_cast %30 : vector<16xf32> to vector<16x1xf32>
    %cst_7 = arith.constant 1.000000e+00 : f32
    %32 = vector.broadcast %cst_7 : f32 to vector<16x1xf32>
    %33 = arith.addf %31, %32 : vector<16x1xf32>
    %cst_8 = arith.constant 1.000000e+00 : f32
    %34 = vector.broadcast %cst_8 : f32 to vector<16x1xf32>
    %35 = arith.divf %34, %33 : vector<16x1xf32>
    %c0_9 = arith.constant 0 : index
    %c0_10 = arith.constant 0 : index
    %36 = vector.load %arg2[%c0_9, %c0_10] : memref<16x128xf32, #tpu.memory_space<vmem>>, vector<16x128xf32>
    %cst_11 = arith.constant dense<0.000000e+00> : vector<16x128xf32>
    %37 = tpu.matmul %4, %36, %cst_11 {dimension_numbers = #tpu.dot_dimension_numbers<[1], [0], [0], [1], [0, 0, 1, 1], [], []>} : vector<16x16xf32>, vector<16x128xf32>, vector<16x128xf32> -> vector<16x128xf32>
    %cst_12 = arith.constant dense<0.000000e+00> : vector<16x128xf32>
    %38 = tpu.matmul %8, %36, %cst_12 {dimension_numbers = #tpu.dot_dimension_numbers<[1], [0], [0], [1], [0, 0, 1, 1], [], []>} : vector<16x16xf32>, vector<16x128xf32>, vector<16x128xf32> -> vector<16x128xf32>
    %cst_13 = arith.constant dense<0.000000e+00> : vector<16x128xf32>
    %39 = tpu.matmul %12, %36, %cst_13 {dimension_numbers = #tpu.dot_dimension_numbers<[1], [0], [0], [1], [0, 0, 1, 1], [], []>} : vector<16x16xf32>, vector<16x128xf32>, vector<16x128xf32> -> vector<16x128xf32>
    %cst_14 = arith.constant dense<0.000000e+00> : vector<16x128xf32>
    %40 = tpu.matmul %16, %36, %cst_14 {dimension_numbers = #tpu.dot_dimension_numbers<[1], [0], [0], [1], [0, 0, 1, 1], [], []>} : vector<16x16xf32>, vector<16x128xf32>, vector<16x128xf32> -> vector<16x128xf32>
    %cst_15 = arith.constant dense<0.000000e+00> : vector<16x128xf32>
    %41 = tpu.matmul %20, %36, %cst_15 {dimension_numbers = #tpu.dot_dimension_numbers<[1], [0], [0], [1], [0, 0, 1, 1], [], []>} : vector<16x16xf32>, vector<16x128xf32>, vector<16x128xf32> -> vector<16x128xf32>
    %cst_16 = arith.constant dense<0.000000e+00> : vector<16x128xf32>
    %42 = tpu.matmul %24, %36, %cst_16 {dimension_numbers = #tpu.dot_dimension_numbers<[1], [0], [0], [1], [0, 0, 1, 1], [], []>} : vector<16x16xf32>, vector<16x128xf32>, vector<16x128xf32> -> vector<16x128xf32>
    %43 = tpu.concatenate %36, %37, %38, %39, %40, %41, %42 in 1 : vector<16x128xf32>, vector<16x128xf32>, vector<16x128xf32>, vector<16x128xf32>, vector<16x128xf32>, vector<16x128xf32>, vector<16x128xf32> -> vector<16x896xf32>
    %c0_17 = arith.constant 0 : index
    %c0_18 = arith.constant 0 : index
    %44 = vector.load %arg3[%c0_17, %c0_18] : memref<896x128xf32, #tpu.memory_space<vmem>>, vector<896x128xf32>
    %cst_19 = arith.constant dense<0.000000e+00> : vector<16x128xf32>
    %45 = tpu.matmul %43, %44, %cst_19 {dimension_numbers = #tpu.dot_dimension_numbers<[1], [0], [0], [1], [0, 0, 1, 1], [], []>} : vector<16x896xf32>, vector<896x128xf32>, vector<16x128xf32> -> vector<16x128xf32>
    %46 = vector.broadcast %35 : vector<16x1xf32> to vector<16x128xf32>
    %47 = arith.mulf %45, %46 : vector<16x128xf32>
    %cst_20 = arith.constant 0.000000e+00 : f32
    %48 = vector.broadcast %cst_20 : f32 to vector<16x128xf32>
    %49 = arith.maximumf %47, %48 : vector<16x128xf32>
    %cst_21 = arith.constant dense<0.000000e+00> : vector<16x128xf32>
    %50 = tpu.matmul %4, %49, %cst_21 {dimension_numbers = #tpu.dot_dimension_numbers<[1], [0], [0], [1], [0, 0, 1, 1], [], []>} : vector<16x16xf32>, vector<16x128xf32>, vector<16x128xf32> -> vector<16x128xf32>
    %cst_22 = arith.constant dense<0.000000e+00> : vector<16x128xf32>
    %51 = tpu.matmul %8, %49, %cst_22 {dimension_numbers = #tpu.dot_dimension_numbers<[1], [0], [0], [1], [0, 0, 1, 1], [], []>} : vector<16x16xf32>, vector<16x128xf32>, vector<16x128xf32> -> vector<16x128xf32>
    %cst_23 = arith.constant dense<0.000000e+00> : vector<16x128xf32>
    %52 = tpu.matmul %12, %49, %cst_23 {dimension_numbers = #tpu.dot_dimension_numbers<[1], [0], [0], [1], [0, 0, 1, 1], [], []>} : vector<16x16xf32>, vector<16x128xf32>, vector<16x128xf32> -> vector<16x128xf32>
    %cst_24 = arith.constant dense<0.000000e+00> : vector<16x128xf32>
    %53 = tpu.matmul %16, %49, %cst_24 {dimension_numbers = #tpu.dot_dimension_numbers<[1], [0], [0], [1], [0, 0, 1, 1], [], []>} : vector<16x16xf32>, vector<16x128xf32>, vector<16x128xf32> -> vector<16x128xf32>
    %cst_25 = arith.constant dense<0.000000e+00> : vector<16x128xf32>
    %54 = tpu.matmul %20, %49, %cst_25 {dimension_numbers = #tpu.dot_dimension_numbers<[1], [0], [0], [1], [0, 0, 1, 1], [], []>} : vector<16x16xf32>, vector<16x128xf32>, vector<16x128xf32> -> vector<16x128xf32>
    %cst_26 = arith.constant dense<0.000000e+00> : vector<16x128xf32>
    %55 = tpu.matmul %24, %49, %cst_26 {dimension_numbers = #tpu.dot_dimension_numbers<[1], [0], [0], [1], [0, 0, 1, 1], [], []>} : vector<16x16xf32>, vector<16x128xf32>, vector<16x128xf32> -> vector<16x128xf32>
    %56 = tpu.concatenate %49, %50, %51, %52, %53, %54, %55 in 1 : vector<16x128xf32>, vector<16x128xf32>, vector<16x128xf32>, vector<16x128xf32>, vector<16x128xf32>, vector<16x128xf32>, vector<16x128xf32> -> vector<16x896xf32>
    %c0_27 = arith.constant 0 : index
    %c0_28 = arith.constant 0 : index
    %57 = vector.load %arg4[%c0_27, %c0_28] : memref<896x128xf32, #tpu.memory_space<vmem>>, vector<896x128xf32>
    %cst_29 = arith.constant dense<0.000000e+00> : vector<16x128xf32>
    %58 = tpu.matmul %56, %57, %cst_29 {dimension_numbers = #tpu.dot_dimension_numbers<[1], [0], [0], [1], [0, 0, 1, 1], [], []>} : vector<16x896xf32>, vector<896x128xf32>, vector<16x128xf32> -> vector<16x128xf32>
    %cst_30 = arith.constant 0.000000e+00 : f32
    %59 = vector.broadcast %cst_30 : f32 to vector<16x128xf32>
    %60 = arith.maximumf %58, %59 : vector<16x128xf32>
    %c0_31 = arith.constant 0 : index
    %c0_32 = arith.constant 0 : index
    %61 = vector.load %arg5[%c0_31, %c0_32] : memref<16x128xf32, #tpu.memory_space<vmem>>, vector<16x128xf32>
    tpu.vector_store %arg5[%c0_31, %c0_32], %60 {strides = array<i32>} : memref<16x128xf32, #tpu.memory_space<vmem>>, vector<16x128xf32>,
    return
  }
  func.func @transform_0(%arg0: i32) -> (i32, i32) {
    %c0_i32 = arith.constant 0 : i32
    %c0_i32_0 = arith.constant 0 : i32
    %c0_i32_1 = arith.constant 0 : i32
    return %c0_i32, %c0_i32_0 : i32, i32
  }
  func.func @transform_1(%arg0: i32) -> (i32, i32) {
    %c0_i32 = arith.constant 0 : i32
    %c0_i32_0 = arith.constant 0 : i32
    %c0_i32_1 = arith.constant 0 : i32
    return %c0_i32, %c0_i32_0 : i32, i32
  }
  func.func @transform_2(%arg0: i32) -> (i32, i32) {
    %c0_i32 = arith.constant 0 : i32
    %c0_i32_0 = arith.constant 0 : i32
    %c0_i32_1 = arith.constant 0 : i32
    return %c0_i32, %c0_i32_0 : i32, i32
  }
  func.func @transform_3(%arg0: i32) -> (i32, i32) {
    %c0_i32 = arith.constant 0 : i32
    %c0_i32_0 = arith.constant 0 : i32
    %c0_i32_1 = arith.constant 0 : i32
    return %c0_i32, %c0_i32_0 : i32, i32
  }
  func.func @transform_4(%arg0: i32) -> (i32, i32) {
    %c0_i32 = arith.constant 0 : i32
    %c0_i32_0 = arith.constant 0 : i32
    %c0_i32_1 = arith.constant 0 : i32
    return %c0_i32, %c0_i32_0 : i32, i32
  }
}

</mosaic_0001>

<bundles_post_ra>
// kernel: tpu_custom_call.1
= control target key start
LH: loop header
LB: loop body
LE: loop exit
PB: predicated region body
PF: predicated region fallthrough
CT: control target
= control target key end

     0   :  { %9 = vsyncpa [#allocation3], 0  ;;  %s1452_s0 = inlined_call_operand.hbm [shape: f32[16,16], index: 0, kind: input, shape index: {}]   ;;  %s1453_s1 = inlined_call_operand.hbm [shape: f32[16,128], index: 1, kind: input, shape index: {}]   ;;  %s1454_s2 = inlined_call_operand.hbm [shape: f32[896,128], index: 2, kind: input, shape index: {}]   ;;  %s1455_s3 = inlined_call_operand.hbm [shape: f32[896,128], index: 3, kind: input, shape index: {}]   ;;  %s1456_s4 = inlined_call_operand.hbm [shape: f32[16,128], index: 4, kind: output, shape index: {}]  }
   0x1   :  { %10 = vsyncpa [#allocation6], 0 }
   0x2   :  { %11 = vsyncpa [#allocation9], 0 }
   0x3   :  { %12 = vsyncpa [#allocation4], 0  ;;  %s30_s17 = sshll.u32 %s1453_s1, 4  ;;  %s1233_s18 = smov [#allocation5]   ;;  %s31_s17 = int_to_ptr.hbm [resolvable:$true] %s30_s17 }
   0x4   :  { %s32_s19 = sshll.u32 %s1233_s18, 4  ;;  %s17_s22 = sshll.u32 %s1452_s0, 4  ;;  %s33_s19 = int_to_ptr.vmem [resolvable:$true] %s32_s19  ;;  %s18_s22 = int_to_ptr.hbm [resolvable:$true] %s17_s22 }
   0x5   :  { %s1234_s23 = smov 128   ;;  %s1235_s24 = smov 8  }
   0x6   :  { %38 = dma.hbm_to_vmem [thread:$0]  %s31_s17, 256, %s33_s19, [#allocation6], %s1234_s23, %s1234_s23, %s1235_s24  }
   0x7   :  { %s1236_s25 = smov [#allocation2]   ;;  %s43_s1 = sshll.u32 %s1454_s2, 4  ;;  %s44_s1 = int_to_ptr.hbm [resolvable:$true] %s43_s1 }
   0x8   :  { %s19_s26 = sshll.u32 %s1236_s25, 4  ;;  %s56_s30 = sshll.u32 %s1455_s3, 4  ;;  %s20_s26 = int_to_ptr.vmem [resolvable:$true] %s19_s26  ;;  %s57_s30 = int_to_ptr.hbm [resolvable:$true] %s56_s30 }
   0x9   :  { %25 = dma.hbm_to_vmem [thread:$0]  %s18_s22, 256, %s20_s26, [#allocation3], %s1234_s23, %s1234_s23, %s1235_s24  }
   0xa   :  { %s1237_s5 = smov [#allocation7]   ;;  %s1238_s7 = smov [#allocation8]  }
   0xb   :  { %s45_s6 = sshll.u32 %s1237_s5, 4  ;;  %s58_s2 = sshll.u32 %s1238_s7, 4  ;;  %s46_s6 = int_to_ptr.vmem [resolvable:$true] %s45_s6  ;;  %s59_s2 = int_to_ptr.vmem [resolvable:$true] %s58_s2 }
   0xc   :  { %51 = dma.hbm_to_vmem [thread:$0]  %s44_s1, 14336, %s46_s6, [#allocation6], %s1234_s23, %s1234_s23, %s1235_s24  }
   0xd   :  { %64 = dma.hbm_to_vmem [thread:$0]  %s57_s30, 14336, %s59_s2, [#allocation9], %s1234_s23, %s1234_s23, %s1235_s24  }
   0xe   :  { %1225 = dma.done.wait [#allocation3], 256  }
   0xf   :  { %1226 = vsyncadd [#allocation3], 4294967040 }
  0x10   :  { %1227 = dma.done.wait [#allocation6], 14592  }
  0x11   :  { %1228 = vsyncadd [#allocation6], 4294952704 }
  0x12   :  { %1229 = dma.done.wait [#allocation9], 14336  }
  0x13   :  { %1230 = vsyncadd [#allocation9], 4294952960  ;;  %v1290_v0 = vld [vmem:[#allocation5 + $0x8] sm:$0xff]  ;;  %v1292_v1 = vld [vmem:[#allocation5] sm:$0xff]  ;;  %vm129_vm1 = vcmask 130048   ;;  %v1239_v3 = vmov 0.0  }
  0x14   :  { %v1294_v2 = vld [vmem:[#allocation2] sm:$0xff]  ;;  %190 = vmatpush.msra.mxu1 %v1290_v0  ;;  %277 = vmatpush.msra.mxu3 %v1290_v0  ;;  %v1312_v6 = vld [vmem:[#allocation2 + $0x8] sm:$0xff]  ;;  %v359_v13 = vld [vmem:[#allocation7 + $0x78] sm:$0xff]  ;;  %s1240_s3 = smov [#allocation10]   ;;  %s1042_s11 = sshll.u32 %s1456_s4, 4  ;;  %s1043_s11 = int_to_ptr.hbm [resolvable:$true] %s1042_s11 }
  0x15   :  { %vm83_vm0 = vcmp.eq.f32.partialorder %v1294_v2, 0.1  ;;  %vm101_vm2 = vcmp.eq.f32.partialorder %v1294_v2, 0.4  ;;  %vm107_vm3 = vcmp.eq.f32.partialorder %v1294_v2, 0.5  ;;  %248 = vmatpush.msra.mxu2 %v1290_v0  ;;  %306 = vmatpush.msra.mxu0 %v1290_v0  ;;  %vm108_vm8 = vcmp.eq.f32.partialorder %v1312_v6, 0.5 }
  0x16   :  { %v1302_v4 = vsel %vm83_vm0, 1.0, %v1239_v3  ;;  %v1305_v5 = vsel %vm101_vm2, 1.0, %v1239_v3  ;;  %vm95_vm4 = vcmp.eq.f32.partialorder %v1294_v2, 0.3  ;;  %191 = vmatpush.msra.mxu1 %v1292_v1  ;;  %278 = vmatpush.msra.mxu3 %v1292_v1  ;;  %v1322_v8 = vsel %vm107_vm3, 1.0, %v1239_v3  ;;  %v358_v14 = vld [vmem:[#allocation7 + $0x70] sm:$0xff] }
  0x17   :  { %v1315_v7 = vsel %vm95_vm4, 1.0, %v1239_v3  ;;  %1069 = vmatmul.msk.f32.vlgmr.msra.gmra.mxu1 %vm129_vm1, %v1302_v4  ;;  %1075 = vmatmul.msk.f32.vlgmr.msra.gmra.mxu3 %vm129_vm1, %v1305_v5  ;;  %vm84_vm5 = vcmp.eq.f32.partialorder %v1312_v6, 0.1  ;;  %vm102_vm6 = vcmp.eq.f32.partialorder %v1312_v6, 0.4  ;;  %v1352_v12 = vsel %vm108_vm8, 1.0, %v1239_v3 }
  0x18   :  { %249 = vmatpush.msra.mxu2 %v1292_v1  ;;  %219 = vmatpush.msrb.mxu1 %v1290_v0  ;;  %vm96_vm7 = vcmp.eq.f32.partialorder %v1312_v6, 0.3  ;;  %v1337_v9 = vsel %vm84_vm5, 1.0, %v1239_v3  ;;  %v1340_v10 = vsel %vm102_vm6, 1.0, %v1239_v3  ;;  %v375_v15 = vld [vmem:[#allocation7 + $0xf8] sm:$0xff]  ;;  %v374_v16 = vld [vmem:[#allocation7 + $0xf0] sm:$0xff] }
  0x19   :  { %1073 = vmatmul.msk.f32.vlgmr.msra.gmra.mxu2 %vm129_vm1, %v1315_v7  ;;  %307 = vmatpush.msra.mxu0 %v1292_v1  ;;  %v1345_v11 = vsel %vm96_vm7, 1.0, %v1239_v3  ;;  %vm89_vm9 = vcmp.eq.f32.partialorder %v1294_v2, 0.2  ;;  %v357_v17 = vld [vmem:[#allocation7 + $0x68] sm:$0xff]  ;;  %v356_v19 = vld [vmem:[#allocation7 + $0x60] sm:$0xff]  ;;  %v355_v22 = vld [vmem:[#allocation7 + $0x58] sm:$0xff] }
  0x1a   :  { %220 = vmatpush.msrb.mxu1 %v1292_v1  ;;  %1077 = vmatmul.msk.f32.vlgmr.msra.gmra.mxu0 %vm129_vm1, %v1322_v8  ;;  %v373_v18 = vld [vmem:[#allocation7 + $0xe8] sm:$0xff]  ;;  %v1360_v20 = vsel %vm89_vm9, 1.0, %v1239_v3  ;;  %v372_v21 = vld [vmem:[#allocation7 + $0xe0] sm:$0xff]  ;;  %v391_v23 = vld [vmem:[#allocation7 + $0x178] sm:$0xff]  ;;  %vm90_vm10 = vcmp.eq.f32.partialorder %v1312_v6, 0.2 }
  0x1b   :  { %456 = vmatpush.msrb.mxu2 %v359_v13  ;;  %479 = vmatpush.msrb.mxu3 %v375_v15  ;;  %v371_v24 = vld [vmem:[#allocation7 + $0xd8] sm:$0xff]  ;;  %v390_v25 = vld [vmem:[#allocation7 + $0x170] sm:$0xff]  ;;  %v389_v27 = vld [vmem:[#allocation7 + $0x168] sm:$0xff]  ;;  %v1366_v34 = vsel %vm90_vm10, 1.0, %v1239_v3  ;;  %vm113_vm11 = vcmp.eq.f32.partialorder %v1294_v2, 0.6 }
  0x1c   :  { %335 = vmatpush.msra.mxu1 %v1290_v0  ;;  %502 = vmatpush.msrb.mxu0 %v391_v23  ;;  %v354_v26 = vld [vmem:[#allocation7 + $0x50] sm:$0xff]  ;;  %v353_v29 = vld [vmem:[#allocation7 + $0x48] sm:$0xff]  ;;  %v388_v30 = vld [vmem:[#allocation7 + $0x160] sm:$0xff]  ;;  %v1372_v50 = vsel %vm113_vm11, 1.0, %v1239_v3  ;;  %vm114_vm12 = vcmp.eq.f32.partialorder %v1312_v6, 0.6 }
  0x1d   :  { %457 = vmatpush.msrb.mxu2 %v358_v14  ;;  %480 = vmatpush.msrb.mxu3 %v374_v16  ;;  %v370_v28 = vld [vmem:[#allocation7 + $0xd0] sm:$0xff]  ;;  %v369_v31 = vld [vmem:[#allocation7 + $0xc8] sm:$0xff]  ;;  %v352_v32 = vld [vmem:[#allocation7 + $0x40] sm:$0xff]  ;;  %v1378_v14 = vsel %vm114_vm12, 1.0, %v1239_v3  ;;  %s1040_s8 = sshll.u32 %s1240_s3, 4  ;;  %s1041_s8 = int_to_ptr.vmem [resolvable:$true] %s1040_s8 }
  0x1e   :  { %336 = vmatpush.msra.mxu1 %v1292_v1  ;;  %503 = vmatpush.msrb.mxu0 %v390_v25  ;;  %v387_v33 = vld [vmem:[#allocation7 + $0x158] sm:$0xff]  ;;  %v368_v35 = vld [vmem:[#allocation7 + $0xc0] sm:$0xff]  ;;  %v386_v37 = vld [vmem:[#allocation7 + $0x150] sm:$0xff] }
  0x1f   :  { %1070 = vmatmul.msk.f32.gmra.mxu1 %vm129_vm1, %v1337_v9  ;;  %1076 = vmatmul.msk.f32.gmra.mxu3 %vm129_vm1, %v1340_v10  ;;  %v351_v36 = vld [vmem:[#allocation7 + $0x38] sm:$0xff]  ;;  %v350_v40 = vld [vmem:[#allocation7 + $0x30] sm:$0xff]  ;;  %v385_v41 = vld [vmem:[#allocation7 + $0x148] sm:$0xff] }
  0x20   :  { %458 = vmatpush.msrb.mxu2 %v357_v17  ;;  %481 = vmatpush.msrb.mxu3 %v373_v18  ;;  %v367_v38 = vld [vmem:[#allocation7 + $0xb8] sm:$0xff]  ;;  %v366_v42 = vld [vmem:[#allocation7 + $0xb0] sm:$0xff]  ;;  %v349_v44 = vld [vmem:[#allocation7 + $0x28] sm:$0xff] }
  0x21   :  { %1074 = vmatmul.msk.f32.gmra.mxu2 %vm129_vm1, %v1345_v11  ;;  %504 = vmatpush.msrb.mxu0 %v389_v27  ;;  %v407_v39 = vld [vmem:[#allocation7 + $0x1f8] sm:$0xff]  ;;  %v406_v43 = vld [vmem:[#allocation7 + $0x1f0] sm:$0xff]  ;;  %v384_v45 = vld [vmem:[#allocation7 + $0x140] sm:$0xff] }
  0x22   :  { %1078 = vmatmul.msk.f32.gmra.mxu0 %vm129_vm1, %v1352_v12  ;;  %459 = vmatpush.msrb.mxu2 %v356_v19  ;;  %v365_v46 = vld [vmem:[#allocation7 + $0xa8] sm:$0xff]  ;;  %v348_v48 = vld [vmem:[#allocation7 + $0x20] sm:$0xff]  ;;  %v383_v49 = vld [vmem:[#allocation7 + $0x138] sm:$0xff] }
  0x23   :  { %482 = vmatpush.msrb.mxu3 %v372_v21  ;;  %505 = vmatpush.msrb.mxu0 %v388_v30  ;;  %v405_v47 = vld [vmem:[#allocation7 + $0x1e8] sm:$0xff]  ;;  %v364_v51 = vld [vmem:[#allocation7 + $0xa0] sm:$0xff]  ;;  %v347_v52 = vld [vmem:[#allocation7 + $0x18] sm:$0xff] }
  0x24   :  { %460 = vmatpush.msrb.mxu2 %v355_v22  ;;  %v382_v53 = vld [vmem:[#allocation7 + $0x130] sm:$0xff]  ;;  %v363_v54 = vld [vmem:[#allocation7 + $0x98] sm:$0xff]  ;;  %v404_v55 = vld [vmem:[#allocation7 + $0x1e0] sm:$0xff] }
  0x25   :  { %483 = vmatpush.msrb.mxu3 %v371_v24  ;;  %506 = vmatpush.msrb.mxu0 %v387_v33  ;;  %v346_v56 = vld [vmem:[#allocation7 + $0x10] sm:$0xff]  ;;  %v381_v57 = vld [vmem:[#allocation7 + $0x128] sm:$0xff]  ;;  %v403_v59 = vld [vmem:[#allocation7 + $0x1d8] sm:$0xff] }
  0x26   :  { %461 = vmatpush.msrb.mxu2 %v354_v26  ;;  %v362_v58 = vld [vmem:[#allocation7 + $0x90] sm:$0xff]  ;;  %v345_v60 = vld [vmem:[#allocation7 + $0x8] sm:$0xff]  ;;  %v380_v61 = vld [vmem:[#allocation7 + $0x120] sm:$0xff] }
  0x27   :  { %1071 = vmatmul.msk.f32.vlgmr.msrb.gmra.mxu1 %vm129_vm1, %v1360_v20  ;;  %484 = vmatpush.msrb.mxu3 %v370_v28  ;;  %v361_v62 = vld [vmem:[#allocation7 + $0x88] sm:$0xff]  ;;  %v402_v63 = vld [vmem:[#allocation7 + $0x1d0] sm:$0xff]  ;;  %v344_v2 = vld [vmem:[#allocation7] sm:$0xff] }
  0x28   :  { %462 = vmatpush.msrb.mxu2 %v353_v29  ;;  %507 = vmatpush.msrb.mxu0 %v386_v37  ;;  %v379_v13 = vld [vmem:[#allocation7 + $0x118] sm:$0xff]  ;;  %v360_v6 = vld [vmem:[#allocation7 + $0x80] sm:$0xff]  ;;  %v378_v16 = vld [vmem:[#allocation7 + $0x110] sm:$0xff] }
  0x29   :  { %485 = vmatpush.msrb.mxu3 %v369_v31  ;;  %525 = vmatpush.msrb.mxu1 %v407_v39  ;;  %v423_v15 = vld [vmem:[#allocation7 + $0x278] sm:$0xff]  ;;  %v422_v17 = vld [vmem:[#allocation7 + $0x270] sm:$0xff]  ;;  %v377_v19 = vld [vmem:[#allocation7 + $0x108] sm:$0xff] }
  0x2a   :  { %463 = vmatpush.msrb.mxu2 %v352_v32  ;;  %508 = vmatpush.msrb.mxu0 %v385_v41  ;;  %v439_v18 = vld [vmem:[#allocation7 + $0x2f8] sm:$0xff]  ;;  %v421_v21 = vld [vmem:[#allocation7 + $0x268] sm:$0xff]  ;;  %v438_v3 = vld [vmem:[#allocation7 + $0x2f0] sm:$0xff] }
  0x2b   :  { %486 = vmatpush.msrb.mxu3 %v368_v35  ;;  %526 = vmatpush.msrb.mxu1 %v406_v43  ;;  %v420_v22 = vld [vmem:[#allocation7 + $0x260] sm:$0xff]  ;;  %v437_v23 = vld [vmem:[#allocation7 + $0x2e8] sm:$0xff]  ;;  %v419_v24 = vld [vmem:[#allocation7 + $0x258] sm:$0xff]  ;;  %v120_v35 = vadd.f32 %v1366_v34, %v1337_v9 }
  0x2c   :  { %464 = vmatpush.msrb.mxu2 %v351_v36  ;;  %509 = vmatpush.msrb.mxu0 %v384_v45  ;;  %v436_v25 = vld [vmem:[#allocation7 + $0x2e0] sm:$0xff]  ;;  %v418_v26 = vld [vmem:[#allocation7 + $0x250] sm:$0xff]  ;;  %v435_v27 = vld [vmem:[#allocation7 + $0x2d8] sm:$0xff]  ;;  %v119_v45 = vadd.f32 %v1360_v20, %v1302_v4 }
  0x2d   :  { %487 = vmatpush.msrb.mxu3 %v367_v38  ;;  %527 = vmatpush.msrb.mxu1 %v405_v47  ;;  %v417_v28 = vld [vmem:[#allocation7 + $0x248] sm:$0xff]  ;;  %v434_v29 = vld [vmem:[#allocation7 + $0x2d0] sm:$0xff]  ;;  %v416_v30 = vld [vmem:[#allocation7 + $0x240] sm:$0xff] }
  0x2e   :  { %465 = vmatpush.msrb.mxu2 %v350_v40  ;;  %510 = vmatpush.msrb.mxu0 %v383_v49  ;;  %v433_v31 = vld [vmem:[#allocation7 + $0x2c8] sm:$0xff]  ;;  %v415_v32 = vld [vmem:[#allocation7 + $0x238] sm:$0xff]  ;;  %v432_v33 = vld [vmem:[#allocation7 + $0x2c0] sm:$0xff] }
  0x2f   :  { %1072 = vmatmul.msk.f32.gmra.mxu1 %vm129_vm1, %v1366_v34  ;;  %488 = vmatpush.msrb.mxu3 %v366_v42  ;;  %v376_v36 = vld [vmem:[#allocation7 + $0x100] sm:$0xff]  ;;  %v414_v38 = vld [vmem:[#allocation7 + $0x230] sm:$0xff]  ;;  %v431_v39 = vld [vmem:[#allocation7 + $0x2b8] sm:$0xff] }
  0x30   :  { %466 = vmatpush.msrb.mxu2 %v349_v44  ;;  %511 = vmatpush.msrb.mxu0 %v382_v53  ;;  %v400_v37 = vld [vmem:[#allocation7 + $0x1c0] sm:$0xff]  ;;  %v399_v40 = vld [vmem:[#allocation7 + $0x1b8] sm:$0xff]  ;;  %v413_v41 = vld [vmem:[#allocation7 + $0x228] sm:$0xff] }
  0x31   :  { %489 = vmatpush.msrb.mxu3 %v365_v46  ;;  %528 = vmatpush.msrb.mxu1 %v404_v55  ;;  %v430_v42 = vld [vmem:[#allocation7 + $0x2b0] sm:$0xff]  ;;  %v122_v46 = vadd.f32 %v1345_v11, %v120_v35  ;;  %v412_v47 = vld [vmem:[#allocation7 + $0x220] sm:$0xff]  ;;  %v453_v49 = vld [vmem:[#allocation7 + $0x368] sm:$0xff] }
  0x32   :  { %467 = vmatpush.msrb.mxu2 %v348_v48  ;;  %512 = vmatpush.msrb.mxu0 %v381_v57  ;;  %v454_v43 = vld [vmem:[#allocation7 + $0x370] sm:$0xff]  ;;  %v429_v48 = vld [vmem:[#allocation7 + $0x2a8] sm:$0xff]  ;;  %v428_v53 = vld [vmem:[#allocation7 + $0x2a0] sm:$0xff] }
  0x33   :  { %490 = vmatpush.msrb.mxu3 %v364_v51  ;;  %529 = vmatpush.msrb.mxu1 %v403_v59  ;;  %v398_v44 = vld [vmem:[#allocation7 + $0x1b0] sm:$0xff]  ;;  %v397_v51 = vld [vmem:[#allocation7 + $0x1a8] sm:$0xff]  ;;  %v452_v55 = vld [vmem:[#allocation7 + $0x360] sm:$0xff] }
  0x34   :  { %468 = vmatpush.msrb.mxu2 %v347_v52  ;;  %513 = vmatpush.msrb.mxu0 %v380_v61  ;;  %v411_v52 = vld [vmem:[#allocation7 + $0x218] sm:$0xff]  ;;  %v396_v57 = vld [vmem:[#allocation7 + $0x1a0] sm:$0xff] }
  0x35   :  { %491 = vmatpush.msrb.mxu3 %v363_v54  ;;  %530 = vmatpush.msrb.mxu1 %v402_v63  ;;  %v121_v54 = vadd.f32 %v1315_v7, %v119_v45  ;;  %v427_v59 = vld [vmem:[#allocation7 + $0x298] sm:$0xff]  ;;  %v440_v35 = vld [vmem:[#allocation7 + $0x300] sm:$0xff] }
  0x36   :  { %469 = vmatpush.msrb.mxu2 %v346_v56  ;;  %514 = vmatpush.msrb.mxu0 %v379_v13  ;;  %v124_v56 = vadd.f32 %v1340_v10, %v122_v46  ;;  %v395_v61 = vld [vmem:[#allocation7 + $0x198] sm:$0xff]  ;;  %v450_v13 = vld [vmem:[#allocation7 + $0x350] sm:$0xff] }
  0x37   :  { %1079 = vmatmul.msk.f32.vlgmr.msra.gmra.mxu1 %vm129_vm1, %v1372_v50  ;;  %492 = vmatpush.msrb.mxu3 %v362_v58  ;;  %v410_v58 = vld [vmem:[#allocation7 + $0x210] sm:$0xff] }
  0x38   :  { %470 = vmatpush.msrb.mxu2 %v345_v60  ;;  %515 = vmatpush.msrb.mxu0 %v378_v16  ;;  %v451_v60 = vld [vmem:[#allocation7 + $0x358] sm:$0xff]  ;;  %v126_v63 = vadd.f32 %v1352_v12, %v124_v56  ;;  %v408_v16 = vld [vmem:[#allocation7 + $0x200] sm:$0xff] }
  0x39   :  { %493 = vmatpush.msrb.mxu3 %v361_v62  ;;  %v409_v62 = vld [vmem:[#allocation7 + $0x208] sm:$0xff] }
  0x3a   :  { %471 = vmatpush.msrb.mxu2 %v344_v2  ;;  %516 = vmatpush.msrb.mxu0 %v377_v19  ;;  %v426_v2 = vld [vmem:[#allocation7 + $0x290] sm:$0xff]  ;;  %v128_v19 = vadd.f32 %v1378_v14, %v126_v63 }
  0x3b   :  { %494 = vmatpush.msrb.mxu3 %v360_v6  ;;  %472 = vmatmul.f32.vlgmr.msrb.gmra.mxu2 %v1292_v1  ;;  %v401_v1 = vld [vmem:[#allocation7 + $0x1c8] sm:$0xff]  ;;  %v123_v6 = vadd.f32 %v1305_v5, %v121_v54 }
  0x3c   :  { %548 = vmatpush.msra.mxu2 %v423_v15  ;;  %531 = vmatpush.msrb.mxu1 %v401_v1  ;;  %v394_v15 = vld [vmem:[#allocation7 + $0x190] sm:$0xff]  ;;  %v443_v1 = vld [vmem:[#allocation7 + $0x318] sm:$0xff] }
  0x3d   :  { %571 = vmatpush.msra.mxu3 %v439_v18  ;;  %517 = vmatpush.msrb.mxu0 %v376_v36  ;;  %v449_v18 = vld [vmem:[#allocation7 + $0x348] sm:$0xff] }
  0x3e   :  { %549 = vmatpush.msra.mxu2 %v422_v17  ;;  %532 = vmatpush.msrb.mxu1 %v400_v37  ;;  %v425_v17 = vld [vmem:[#allocation7 + $0x288] sm:$0xff] }
  0x3f   :  { %1080 = vmatmul.msk.f32.gmra.mxu1 %vm129_vm1, %v1378_v14  ;;  %572 = vmatpush.msra.mxu3 %v438_v3  ;;  %v393_v3 = vld [vmem:[#allocation7 + $0x188] sm:$0xff] }
  0x40   :  { %550 = vmatpush.msra.mxu2 %v421_v21  ;;  %533 = vmatpush.msrb.mxu1 %v399_v40  ;;  %v133_v21 = vsel %vm129_vm1, %v128_v19, 0.0 }
  0x41   :  { %573 = vmatpush.msra.mxu3 %v437_v23  ;;  %v448_v23 = vld [vmem:[#allocation7 + $0x340] sm:$0xff]  ;;  %134 = vadd.xlane.f32.xlu0 %v133_v21 }
  0x42   :  { %551 = vmatpush.msra.mxu2 %v420_v22  ;;  %534 = vmatpush.msrb.mxu1 %v398_v44  ;;  %v424_v22 = vld [vmem:[#allocation7 + $0x280] sm:$0xff] }
  0x43   :  { %574 = vmatpush.msra.mxu3 %v436_v25  ;;  %475 = vmatmul.f32.gmra.mxu2 %v1290_v0  ;;  %v455_v0 = vld [vmem:[#allocation7 + $0x378] sm:$0xff]  ;;  %v392_v25 = vld [vmem:[#allocation7 + $0x180] sm:$0xff] }
  0x44   :  { %552 = vmatpush.msra.mxu2 %v419_v24  ;;  %594 = vmatpush.msra.mxu0 %v455_v0  ;;  %v125_v24 = vadd.f32 %v1322_v8, %v123_v6 }
  0x45   :  { %575 = vmatpush.msra.mxu3 %v435_v27  ;;  %535 = vmatpush.msrb.mxu1 %v397_v51  ;;  %v446_v27 = vld [vmem:[#allocation7 + $0x330] sm:$0xff] }
  0x46   :  { %553 = vmatpush.msra.mxu2 %v418_v26  ;;  %595 = vmatpush.msra.mxu0 %v454_v43  ;;  %v447_v26 = vld [vmem:[#allocation7 + $0x338] sm:$0xff] }
  0x47   :  { %576 = vmatpush.msra.mxu3 %v434_v29  ;;  %536 = vmatpush.msrb.mxu1 %v396_v57  ;;  %v127_v29 = vadd.f32 %v1372_v50, %v125_v24 }
  0x48   :  { %554 = vmatpush.msra.mxu2 %v417_v28  ;;  %596 = vmatpush.msra.mxu0 %v453_v49  ;;  %v445_v28 = vld [vmem:[#allocation7 + $0x328] sm:$0xff] }
  0x49   :  { %577 = vmatpush.msra.mxu3 %v433_v31  ;;  %537 = vmatpush.msrb.mxu1 %v395_v61  ;;  %v444_v31 = vld [vmem:[#allocation7 + $0x320] sm:$0xff] }
  0x4a   :  { %555 = vmatpush.msra.mxu2 %v416_v30  ;;  %597 = vmatpush.msra.mxu0 %v452_v55  ;;  %v130_v30 = vsel %vm129_vm1, %v127_v29, 0.0 }
  0x4b   :  { %578 = vmatpush.msra.mxu3 %v432_v33  ;;  %538 = vmatpush.msrb.mxu1 %v394_v15  ;;  %v441_v33 = vld [vmem:[#allocation7 + $0x308] sm:$0xff] }
  0x4c   :  { %556 = vmatpush.msra.mxu2 %v415_v32  ;;  %598 = vmatpush.msra.mxu0 %v451_v60  ;;  %v442_v32 = vld [vmem:[#allocation7 + $0x310] sm:$0xff] }
  0x4d   :  { %579 = vmatpush.msra.mxu3 %v431_v39  ;;  %539 = vmatpush.msrb.mxu1 %v393_v3 }
  0x4e   :  { %557 = vmatpush.msra.mxu2 %v414_v38  ;;  %599 = vmatpush.msra.mxu0 %v450_v13 }
  0x4f   :  { %580 = vmatpush.msra.mxu3 %v430_v42  ;;  %540 = vmatpush.msrb.mxu1 %v392_v25 }
  0x50   :  { %558 = vmatpush.msra.mxu2 %v413_v41  ;;  %600 = vmatpush.msra.mxu0 %v449_v18 }
  0x51   :  { %581 = vmatpush.msra.mxu3 %v429_v48  ;;  %131 = vadd.xlane.f32.xlu0 %v130_v30 }
  0x52   :  { %559 = vmatpush.msra.mxu2 %v412_v47  ;;  %601 = vmatpush.msra.mxu0 %v448_v23 }
  0x53   :  { %582 = vmatpush.msra.mxu3 %v428_v53 }
  0x54   :  { %560 = vmatpush.msra.mxu2 %v411_v52  ;;  %602 = vmatpush.msra.mxu0 %v447_v26 }
  0x55   :  { %583 = vmatpush.msra.mxu3 %v427_v59 }
  0x56   :  { %561 = vmatpush.msra.mxu2 %v410_v58  ;;  %603 = vmatpush.msra.mxu0 %v446_v27 }
  0x57   :  { %584 = vmatpush.msra.mxu3 %v426_v2 }
  0x58   :  { %562 = vmatpush.msra.mxu2 %v409_v62  ;;  %604 = vmatpush.msra.mxu0 %v445_v28 }
  0x59   :  { %585 = vmatpush.msra.mxu3 %v425_v17 }
  0x5a   :  { %563 = vmatpush.msra.mxu2 %v408_v16  ;;  %605 = vmatpush.msra.mxu0 %v444_v31 }
  0x5b   :  { %586 = vmatpush.msra.mxu3 %v424_v22 }
  0x5c   :  { %606 = vmatpush.msra.mxu0 %v443_v1 }
  0x5e   :  { %607 = vmatpush.msra.mxu0 %v442_v32 }
  0x60   :  { %608 = vmatpush.msra.mxu0 %v441_v33  ;;  %v837_v33 = vld [vmem:[#allocation8 + $0x270] sm:$0xff] }
  0x62   :  { %609 = vmatpush.msra.mxu0 %v440_v35 }
  0x94   :  { %v193_v36 = vpop.f32.mrf.mxu1 }
  0x95   :  { %495 = vmatmul.f32.vlgmr.msrb.gmra.mxu3 %v193_v36 }
  0x97   :  { %v309_v0 = vpop.f32.mrf.mxu0 }
  0x9a   :  { %v280_v37 = vpop.f32.mrf.mxu3 }
  0x9b   :  { %564 = vmatmul.f32.vlgmr.msra.gmra.mxu2 %v280_v37 }
  0x9c   :  { %v196_v38 = vpop.f32.mrf.mxu1  ;;  %v251_v39 = vpop.f32.mrf.mxu2 }
  0x9d   :  { %498 = vmatmul.f32.gmra.mxu3 %v196_v38  ;;  %541 = vmatmul.f32.vlgmr.msrb.gmra.mxu1 %v251_v39 }
  0x9f   :  { %v312_v43 = vpop.f32.mrf.mxu0 }
  0xa2   :  { %v283_v40 = vpop.f32.mrf.mxu3 }
  0xa3   :  { %567 = vmatmul.f32.gmra.mxu2 %v283_v40 }
  0xa4   :  { %v222_v41 = vpop.f32.mrf.mxu1  ;;  %v254_v42 = vpop.f32.mrf.mxu2 }
  0xa5   :  { %518 = vmatmul.f32.vlgmr.msrb.gmra.mxu0 %v222_v41  ;;  %587 = vmatmul.f32.vlgmr.msra.gmra.mxu3 %v309_v0 }
  0xa6   :  { %544 = vmatmul.f32.gmra.mxu1 %v254_v42 }
  0xac   :  { %v225_v44 = vpop.f32.mrf.mxu1 }
  0xad   :  { %521 = vmatmul.f32.gmra.mxu0 %v225_v44  ;;  %590 = vmatmul.f32.gmra.mxu3 %v312_v43 }
  0xb4   :  { %v338_v45 = vpop.f32.mrf.mxu1  ;;  %v135_v47 = vpop.xlane.xlu0 %134 }
  0xb5   :  { %610 = vmatmul.f32.vlgmr.msra.gmra.mxu0 %v338_v45  ;;  %v137_v52 = vadd.f32 1.0, %v135_v47 }
  0xb7   :  { %1101 = vrcp.f32 %v137_v52  ;;  %vm158_vm13 = vweird.f32 %v137_v52  ;;  %v162_v29 = vand.u32 2147483647, %v137_v52  ;;  %v164_v30 = vand.u32 2147483648, %v137_v52 }
  0xb9   :  { %vm163_vm4 = vcmp.eq.f32.partialorder %v162_v29, 8.507059e+37  ;;  %v165_v39 = vor.u32 1.1754944e-38, %v164_v30  ;;  %v759_v29 = vld [vmem:[#allocation8] sm:$0xff]  ;;  %v817_v30 = vld [vmem:[#allocation8 + $0x1d0] sm:$0xff] }
  0xbc   :  { %v341_v46 = vpop.f32.mrf.mxu1 }
  0xbd   :  { %613 = vmatmul.f32.gmra.mxu0 %v341_v46  ;;  %v1102_v58 = vpop.eup %1101 }
  0xbe   :  { %v473_v48 = vpop.f32.mrf.mxu2  ;;  %v154_v60 = vmul.f32 %v1102_v58, %v137_v52  ;;  %vm159_vm14 = vweird.f32 %v1102_v58  ;;  %v773_v52 = vld [vmem:[#allocation8 + $0x70] sm:$0xff] }
  0xbf   :  { %vm1398_vm2 = vmor %vm158_vm13, %vm159_vm14 }
  0xc0   :  { %v155_v6 = vsub.f32 1.0, %v154_v60  ;;  %v787_v60 = vld [vmem:[#allocation8 + $0xe0] sm:$0xff] }
  0xc2   :  { %v156_v3 = vmul.f32 %v1102_v58, %v155_v6  ;;  %v763_v6 = vld [vmem:[#allocation8 + $0x20] sm:$0xff] }
  0xc4   :  { %v132_v51 = vpop.xlane.xlu0 %131  ;;  %v157_v28 = vadd.f32 %v1102_v58, %v156_v3  ;;  %v761_v3 = vld [vmem:[#allocation8 + $0x10] sm:$0xff] }
  0xc5   :  { %v136_v53 = vadd.f32 1.0, %v132_v51  ;;  %v774_v51 = vld [vmem:[#allocation8 + $0x78] sm:$0xff] }
  0xc6   :  { %v476_v54 = vpop.f32.mrf.mxu2  ;;  %v161_v38 = vsel %vm1398_vm2, %v1102_v58, %v157_v28  ;;  %v805_v58 = vld [vmem:[#allocation8 + $0x170] sm:$0xff]  ;;  %v798_v28 = vld [vmem:[#allocation8 + $0x138] sm:$0xff] }
  0xc7   :  { %1103 = vrcp.f32 %v136_v53  ;;  %vm143_vm15 = vweird.f32 %v136_v53  ;;  %v149_v27 = vand.u32 2147483648, %v136_v53  ;;  %v147_v32 = vand.u32 2147483647, %v136_v53 }
  0xc8   :  { %v166_v45 = vsel %vm163_vm4, %v165_v39, %v161_v38  ;;  %v777_v38 = vld [vmem:[#allocation8 + $0x90] sm:$0xff]  ;;  %v795_v39 = vld [vmem:[#allocation8 + $0x120] sm:$0xff] }
  0xc9   :  { %v150_v37 = vor.u32 1.1754944e-38, %v149_v27  ;;  %vm148_vm5 = vcmp.eq.f32.partialorder %v147_v32, 8.507059e+37  ;;  %v781_v27 = vld [vmem:[#allocation8 + $0xb0] sm:$0xff] }
  0xca   :  { %v797_v32 = vld [vmem:[#allocation8 + $0x130] sm:$0xff] }
  0xcd   :  { %v1104_v59 = vpop.eup %1103 }
  0xce   :  { %v139_v63 = vmul.f32 %v1104_v59, %v136_v53  ;;  %vm144_vm0 = vweird.f32 %v1104_v59  ;;  %v772_v53 = vld [vmem:[#allocation8 + $0x68] sm:$0xff] }
  0xcf   :  { %vm145_vm3 = vmor %vm143_vm15, %vm144_vm0 }
  0xd0   :  { %v140_v17 = vsub.f32 1.0, %v139_v63  ;;  %v822_v63 = vld [vmem:[#allocation8 + $0x1f8] sm:$0xff] }
  0xd2   :  { %v141_v23 = vmul.f32 %v1104_v59, %v140_v17  ;;  %v801_v17 = vld [vmem:[#allocation8 + $0x150] sm:$0xff] }
  0xd4   :  { %v142_v1 = vadd.f32 %v1104_v59, %v141_v23  ;;  %v782_v23 = vld [vmem:[#allocation8 + $0xb8] sm:$0xff] }
  0xd6   :  { %v146_v40 = vsel %vm145_vm3, %v1104_v59, %v142_v1  ;;  %v766_v59 = vld [vmem:[#allocation8 + $0x38] sm:$0xff]  ;;  %v779_v1 = vld [vmem:[#allocation8 + $0xa0] sm:$0xff] }
  0xd7   :  { %v151_v44 = vsel %vm148_vm5, %v150_v37, %v146_v40  ;;  %v836_v37 = vld [vmem:[#allocation8 + $0x268] sm:$0xff] }
  0xd8   :  { %v776_v40 = vld [vmem:[#allocation8 + $0x88] sm:$0xff] }
 0x118   :  { %v496_v49 = vpop.f32.mrf.mxu3 }
 0x119   :  { %v497_v62 = vadd.f32 %v496_v49, %v473_v48 }
 0x11a   :  { %v542_v57 = vpop.f32.mrf.mxu1 }
 0x11e   :  { %v565_v61 = vpop.f32.mrf.mxu2 }
 0x120   :  { %v499_v55 = vpop.f32.mrf.mxu3 }
 0x121   :  { %v500_v13 = vadd.f32 %v499_v55, %v476_v54  ;;  %v771_v54 = vld [vmem:[#allocation8 + $0x60] sm:$0xff]  ;;  %v769_v55 = vld [vmem:[#allocation8 + $0x50] sm:$0xff] }
 0x122   :  { %v519_v56 = vpop.f32.mrf.mxu0 }
 0x123   :  { %v520_v15 = vadd.f32 %v519_v56, %v497_v62  ;;  %v545_v19 = vpop.f32.mrf.mxu1  ;;  %v767_v56 = vld [vmem:[#allocation8 + $0x40] sm:$0xff]  ;;  %v764_v62 = vld [vmem:[#allocation8 + $0x28] sm:$0xff] }
 0x125   :  { %v543_v21 = vadd.f32 %v542_v57, %v520_v15  ;;  %v806_v57 = vld [vmem:[#allocation8 + $0x178] sm:$0xff]  ;;  %v821_v15 = vld [vmem:[#allocation8 + $0x1f0] sm:$0xff] }
 0x126   :  { %v568_v24 = vpop.f32.mrf.mxu2 }
 0x127   :  { %v566_v26 = vadd.f32 %v565_v61, %v543_v21  ;;  %v765_v61 = vld [vmem:[#allocation8 + $0x30] sm:$0xff]  ;;  %v800_v21 = vld [vmem:[#allocation8 + $0x148] sm:$0xff] }
 0x128   :  { %v588_v16 = vpop.f32.mrf.mxu3 }
 0x129   :  { %v589_v36 = vadd.f32 %v588_v16, %v566_v26  ;;  %v784_v16 = vld [vmem:[#allocation8 + $0xc8] sm:$0xff]  ;;  %v818_v26 = vld [vmem:[#allocation8 + $0x1d8] sm:$0xff] }
 0x12a   :  { %v522_v2 = vpop.f32.mrf.mxu0 }
 0x12b   :  { %v523_v18 = vadd.f32 %v522_v2, %v500_v13  ;;  %v785_v2 = vld [vmem:[#allocation8 + $0xd0] sm:$0xff]  ;;  %v802_v13 = vld [vmem:[#allocation8 + $0x158] sm:$0xff] }
 0x12d   :  { %v546_v22 = vadd.f32 %v545_v19, %v523_v18  ;;  %v762_v18 = vld [vmem:[#allocation8 + $0x18] sm:$0xff]  ;;  %v783_v19 = vld [vmem:[#allocation8 + $0xc0] sm:$0xff] }
 0x12f   :  { %v569_v31 = vadd.f32 %v568_v24, %v546_v22  ;;  %v819_v22 = vld [vmem:[#allocation8 + $0x1e0] sm:$0xff] }
 0x130   :  { %v591_v35 = vpop.f32.mrf.mxu3  ;;  %v799_v24 = vld [vmem:[#allocation8 + $0x140] sm:$0xff] }
 0x131   :  { %v592_v0 = vadd.f32 %v591_v35, %v569_v31  ;;  %v780_v31 = vld [vmem:[#allocation8 + $0xa8] sm:$0xff]  ;;  %v778_v35 = vld [vmem:[#allocation8 + $0x98] sm:$0xff] }
 0x132   :  { %v611_v25 = vpop.f32.mrf.mxu0 }
 0x133   :  { %v612_v41 = vadd.f32 %v611_v25, %v589_v36  ;;  %v760_v25 = vld [vmem:[#allocation8 + $0x8] sm:$0xff] }
 0x134   :  { %v796_v36 = vld [vmem:[#allocation8 + $0x128] sm:$0xff] }
 0x135   :  { %v617_v46 = vmul.f32 %v612_v41, %v151_v44  ;;  %v834_v41 = vld [vmem:[#allocation8 + $0x258] sm:$0xff]  ;;  %v833_v44 = vld [vmem:[#allocation8 + $0x250] sm:$0xff] }
 0x137   :  { %v1406_v49 = vmax.f32 %v617_v46, 0.0  ;;  %v853_v46 = vld [vmem:[#allocation8 + $0x2f0] sm:$0xff] }
 0x13a   :  { %v614_v42 = vpop.f32.mrf.mxu0 }
 0x13b   :  { %v615_v43 = vadd.f32 %v614_v42, %v592_v0  ;;  %v835_v0 = vld [vmem:[#allocation8 + $0x260] sm:$0xff] }
 0x13c   :  { %v775_v42 = vld [vmem:[#allocation8 + $0x80] sm:$0xff] }
 0x13d   :  { %v618_v47 = vmul.f32 %v615_v43, %v166_v45  ;;  %v854_v43 = vld [vmem:[#allocation8 + $0x2f8] sm:$0xff]  ;;  %v793_v45 = vld [vmem:[#allocation8 + $0x110] sm:$0xff] }
 0x13f   :  { %v1404_v48 = vmax.f32 %v618_v47, 0.0  ;;  %v832_v47 = vld [vmem:[#allocation8 + $0x248] sm:$0xff] }
 0x141   :  { %635 = vmatpush.msra.mxu1 %v1404_v48  ;;  %681 = vmatpush.msrb.mxu2 %v1404_v48 }
 0x142   :  { %704 = vmatpush.msrb.mxu3 %v1404_v48  ;;  %727 = vmatpush.msrb.mxu0 %v1404_v48 }
 0x143   :  { %636 = vmatpush.msra.mxu1 %v1406_v49  ;;  %682 = vmatpush.msrb.mxu2 %v1406_v49 }
 0x144   :  { %705 = vmatpush.msrb.mxu3 %v1406_v49  ;;  %728 = vmatpush.msrb.mxu0 %v1406_v49 }
 0x145   :  { %1081 = vmatmul.msk.f32.vlgmr.msra.gmra.mxu1 %vm129_vm1, %v1302_v4  ;;  %871 = vmatpush.msra.mxu2 %v774_v51  ;;  %v770_v4 = vld [vmem:[#allocation8 + $0x58] sm:$0xff]  ;;  %v852_v51 = vld [vmem:[#allocation8 + $0x2e8] sm:$0xff] }
 0x146   :  { %658 = vmatpush.msrb.mxu1 %v1404_v48  ;;  %1087 = vmatmul.msk.f32.vlgmr.msrb.gmra.mxu3 %vm129_vm1, %v1305_v5  ;;  %v790_v5 = vld [vmem:[#allocation8 + $0xf8] sm:$0xff] }
 0x147   :  { %872 = vmatpush.msra.mxu2 %v773_v52  ;;  %1089 = vmatmul.msk.f32.vlgmr.msrb.gmra.mxu0 %vm129_vm1, %v1322_v8  ;;  %v768_v8 = vld [vmem:[#allocation8 + $0x48] sm:$0xff]  ;;  %v831_v52 = vld [vmem:[#allocation8 + $0x240] sm:$0xff] }
 0x148   :  { %659 = vmatpush.msrb.mxu1 %v1406_v49  ;;  %1085 = vmatmul.msk.f32.vlgmr.msrb.gmra.mxu2 %vm129_vm1, %v1315_v7  ;;  %v789_v7 = vld [vmem:[#allocation8 + $0xf0] sm:$0xff] }
 0x149   :  { %873 = vmatpush.msra.mxu2 %v772_v53  ;;  %894 = vmatpush.msra.mxu3 %v790_v5  ;;  %v850_v53 = vld [vmem:[#allocation8 + $0x2d8] sm:$0xff]  ;;  %v847_v5 = vld [vmem:[#allocation8 + $0x2c0] sm:$0xff] }
 0x14a   :  { %750 = vmatpush.msra.mxu1 %v1404_v48  ;;  %917 = vmatpush.msra.mxu0 %v806_v57  ;;  %v846_v57 = vld [vmem:[#allocation8 + $0x2b8] sm:$0xff] }
 0x14b   :  { %874 = vmatpush.msra.mxu2 %v771_v54  ;;  %895 = vmatpush.msra.mxu3 %v789_v7  ;;  %v848_v54 = vld [vmem:[#allocation8 + $0x2c8] sm:$0xff]  ;;  %v815_v7 = vld [vmem:[#allocation8 + $0x1c0] sm:$0xff] }
 0x14c   :  { %751 = vmatpush.msra.mxu1 %v1406_v49  ;;  %918 = vmatpush.msra.mxu0 %v805_v58  ;;  %v870_v58 = vld [vmem:[#allocation8 + $0x378] sm:$0xff] }
 0x14d   :  { %1082 = vmatmul.msk.f32.gmra.mxu1 %vm129_vm1, %v1337_v9  ;;  %875 = vmatpush.msra.mxu2 %v770_v4  ;;  %v788_v9 = vld [vmem:[#allocation8 + $0xe8] sm:$0xff] }
 0x14e   :  { %1088 = vmatmul.msk.f32.gmra.mxu3 %vm129_vm1, %v1340_v10  ;;  %v804_v10 = vld [vmem:[#allocation8 + $0x168] sm:$0xff] }
 0x14f   :  { %876 = vmatpush.msra.mxu2 %v769_v55  ;;  %1090 = vmatmul.msk.f32.gmra.mxu0 %vm129_vm1, %v1352_v12  ;;  %v786_v12 = vld [vmem:[#allocation8 + $0xd8] sm:$0xff]  ;;  %v816_v4 = vld [vmem:[#allocation8 + $0x1c8] sm:$0xff] }
 0x150   :  { %1086 = vmatmul.msk.f32.gmra.mxu2 %vm129_vm1, %v1345_v11  ;;  %896 = vmatpush.msra.mxu3 %v788_v9  ;;  %v803_v11 = vld [vmem:[#allocation8 + $0x160] sm:$0xff]  ;;  %v830_v55 = vld [vmem:[#allocation8 + $0x238] sm:$0xff] }
 0x151   :  { %877 = vmatpush.msra.mxu2 %v768_v8  ;;  %919 = vmatpush.msra.mxu0 %v804_v10  ;;  %v791_v8 = vld [vmem:[#allocation8 + $0x100] sm:$0xff]  ;;  %v814_v9 = vld [vmem:[#allocation8 + $0x1b8] sm:$0xff]  ;;  %v869_v10 = vld [vmem:[#allocation8 + $0x370] sm:$0xff] }
 0x152   :  { %897 = vmatpush.msra.mxu3 %v787_v60  ;;  %v845_v60 = vld [vmem:[#allocation8 + $0x2b0] sm:$0xff] }
 0x153   :  { %878 = vmatpush.msra.mxu2 %v767_v56  ;;  %920 = vmatpush.msra.mxu0 %v803_v11  ;;  %v829_v56 = vld [vmem:[#allocation8 + $0x230] sm:$0xff]  ;;  %v844_v11 = vld [vmem:[#allocation8 + $0x2a8] sm:$0xff] }
 0x154   :  { %898 = vmatpush.msra.mxu3 %v786_v12  ;;  %v827_v12 = vld [vmem:[#allocation8 + $0x220] sm:$0xff] }
 0x155   :  { %1083 = vmatmul.msk.f32.vlgmr.msrb.gmra.mxu1 %vm129_vm1, %v1360_v20  ;;  %879 = vmatpush.msra.mxu2 %v766_v59  ;;  %v820_v20 = vld [vmem:[#allocation8 + $0x1e8] sm:$0xff] }
 0x156   :  { %940 = vmatpush.msrb.mxu1 %v822_v63  ;;  %899 = vmatpush.msra.mxu3 %v785_v2  ;;  %v828_v59 = vld [vmem:[#allocation8 + $0x228] sm:$0xff]  ;;  %v826_v2 = vld [vmem:[#allocation8 + $0x218] sm:$0xff] }
 0x157   :  { %880 = vmatpush.msra.mxu2 %v765_v61  ;;  %921 = vmatpush.msra.mxu0 %v802_v13  ;;  %v813_v61 = vld [vmem:[#allocation8 + $0x1b0] sm:$0xff]  ;;  %v812_v63 = vld [vmem:[#allocation8 + $0x1a8] sm:$0xff]  ;;  %v843_v13 = vld [vmem:[#allocation8 + $0x2a0] sm:$0xff] }
 0x158   :  { %941 = vmatpush.msrb.mxu1 %v821_v15  ;;  %900 = vmatpush.msra.mxu3 %v784_v16  ;;  %v867_v15 = vld [vmem:[#allocation8 + $0x360] sm:$0xff]  ;;  %v825_v16 = vld [vmem:[#allocation8 + $0x210] sm:$0xff] }
 0x159   :  { %881 = vmatpush.msra.mxu2 %v764_v62  ;;  %922 = vmatpush.msra.mxu0 %v801_v17  ;;  %v868_v62 = vld [vmem:[#allocation8 + $0x368] sm:$0xff]  ;;  %v842_v17 = vld [vmem:[#allocation8 + $0x298] sm:$0xff] }
 0x15a   :  { %942 = vmatpush.msrb.mxu1 %v820_v20  ;;  %901 = vmatpush.msra.mxu3 %v783_v19  ;;  %v866_v20 = vld [vmem:[#allocation8 + $0x358] sm:$0xff]  ;;  %v824_v19 = vld [vmem:[#allocation8 + $0x208] sm:$0xff] }
 0x15b   :  { %882 = vmatpush.msra.mxu2 %v763_v6  ;;  %923 = vmatpush.msra.mxu0 %v800_v21  ;;  %v811_v6 = vld [vmem:[#allocation8 + $0x1a0] sm:$0xff]  ;;  %v841_v21 = vld [vmem:[#allocation8 + $0x290] sm:$0xff] }
 0x15c   :  { %943 = vmatpush.msrb.mxu1 %v819_v22  ;;  %902 = vmatpush.msra.mxu3 %v782_v23  ;;  %v809_v22 = vld [vmem:[#allocation8 + $0x190] sm:$0xff]  ;;  %v823_v23 = vld [vmem:[#allocation8 + $0x200] sm:$0xff] }
 0x15d   :  { %1084 = vmatmul.msk.f32.gmra.mxu1 %vm129_vm1, %v1366_v34  ;;  %883 = vmatpush.msra.mxu2 %v762_v18  ;;  %v838_v34 = vld [vmem:[#allocation8 + $0x278] sm:$0xff] }
 0x15e   :  { %924 = vmatpush.msra.mxu0 %v799_v24  ;;  %944 = vmatpush.msrb.mxu1 %v818_v26  ;;  %v810_v18 = vld [vmem:[#allocation8 + $0x198] sm:$0xff]  ;;  %v840_v24 = vld [vmem:[#allocation8 + $0x288] sm:$0xff] }
 0x15f   :  { %884 = vmatpush.msra.mxu2 %v761_v3  ;;  %903 = vmatpush.msra.mxu3 %v781_v27  ;;  %v865_v3 = vld [vmem:[#allocation8 + $0x350] sm:$0xff]  ;;  %v808_v26 = vld [vmem:[#allocation8 + $0x188] sm:$0xff]  ;;  %v839_v27 = vld [vmem:[#allocation8 + $0x280] sm:$0xff] }
 0x160   :  { %925 = vmatpush.msra.mxu0 %v798_v28  ;;  %945 = vmatpush.msrb.mxu1 %v817_v30  ;;  %v863_v28 = vld [vmem:[#allocation8 + $0x340] sm:$0xff]  ;;  %v862_v30 = vld [vmem:[#allocation8 + $0x338] sm:$0xff] }
 0x161   :  { %885 = vmatpush.msra.mxu2 %v760_v25  ;;  %904 = vmatpush.msra.mxu3 %v780_v31  ;;  %v864_v25 = vld [vmem:[#allocation8 + $0x348] sm:$0xff]  ;;  %v861_v31 = vld [vmem:[#allocation8 + $0x330] sm:$0xff] }
 0x162   :  { %926 = vmatpush.msra.mxu0 %v797_v32  ;;  %946 = vmatpush.msrb.mxu1 %v816_v4  ;;  %v858_v32 = vld [vmem:[#allocation8 + $0x318] sm:$0xff] }
 0x163   :  { %886 = vmatpush.msra.mxu2 %v759_v29  ;;  %905 = vmatpush.msra.mxu3 %v779_v1  ;;  %v807_v29 = vld [vmem:[#allocation8 + $0x180] sm:$0xff] }
 0x164   :  { %887 = vmatmul.f32.vlgmr.msra.gmra.mxu2 %v1406_v49  ;;  %927 = vmatpush.msra.mxu0 %v796_v36  ;;  %v792_v49 = vld [vmem:[#allocation8 + $0x108] sm:$0xff]  ;;  %v859_v1 = vld [vmem:[#allocation8 + $0x320] sm:$0xff] }
 0x165   :  { %1091 = vmatmul.msk.f32.vlgmr.msra.gmra.mxu1 %vm129_vm1, %v1372_v50  ;;  %963 = vmatpush.msrb.mxu2 %v838_v34  ;;  %v794_v50 = vld [vmem:[#allocation8 + $0x118] sm:$0xff]  ;;  %v860_v34 = vld [vmem:[#allocation8 + $0x328] sm:$0xff] }
 0x166   :  { %906 = vmatpush.msra.mxu3 %v778_v35  ;;  %928 = vmatpush.msra.mxu0 %v795_v39  ;;  %v856_v35 = vld [vmem:[#allocation8 + $0x308] sm:$0xff] }
 0x167   :  { %964 = vmatpush.msrb.mxu2 %v837_v33  ;;  %947 = vmatpush.msrb.mxu1 %v815_v7  ;;  %v857_v33 = vld [vmem:[#allocation8 + $0x310] sm:$0xff] }
 0x168   :  { %907 = vmatpush.msra.mxu3 %v777_v38  ;;  %929 = vmatpush.msra.mxu0 %v794_v50 }
 0x169   :  { %965 = vmatpush.msrb.mxu2 %v836_v37  ;;  %948 = vmatpush.msrb.mxu1 %v814_v9  ;;  %v855_v37 = vld [vmem:[#allocation8 + $0x300] sm:$0xff] }
 0x16a   :  { %908 = vmatpush.msra.mxu3 %v776_v40  ;;  %930 = vmatpush.msra.mxu0 %v793_v45 }
 0x16b   :  { %966 = vmatpush.msrb.mxu2 %v835_v0  ;;  %949 = vmatpush.msrb.mxu1 %v813_v61 }
 0x16c   :  { %890 = vmatmul.f32.gmra.mxu2 %v1404_v48  ;;  %909 = vmatpush.msra.mxu3 %v775_v42  ;;  %v851_v48 = vld [vmem:[#allocation8 + $0x2e0] sm:$0xff] }
 0x16d   :  { %1092 = vmatmul.msk.f32.gmra.mxu1 %vm129_vm1, %v1378_v14  ;;  %967 = vmatpush.msrb.mxu2 %v834_v41  ;;  %v849_v14 = vld [vmem:[#allocation8 + $0x2d0] sm:$0xff] }
 0x16e   :  { %986 = vmatpush.msrb.mxu3 %v854_v43  ;;  %931 = vmatpush.msra.mxu0 %v792_v49 }
 0x16f   :  { %968 = vmatpush.msrb.mxu2 %v833_v44  ;;  %950 = vmatpush.msrb.mxu1 %v812_v63 }
 0x170   :  { %987 = vmatpush.msrb.mxu3 %v853_v46  ;;  %932 = vmatpush.msra.mxu0 %v791_v8 }
 0x171   :  { %969 = vmatpush.msrb.mxu2 %v832_v47  ;;  %951 = vmatpush.msrb.mxu1 %v811_v6 }
 0x172   :  { %988 = vmatpush.msrb.mxu3 %v852_v51  ;;  %1009 = vmatpush.msrb.mxu0 %v870_v58 }
 0x173   :  { %970 = vmatpush.msrb.mxu2 %v831_v52  ;;  %952 = vmatpush.msrb.mxu1 %v810_v18 }
 0x174   :  { %989 = vmatpush.msrb.mxu3 %v851_v48  ;;  %1010 = vmatpush.msrb.mxu0 %v869_v10 }
 0x175   :  { %971 = vmatpush.msrb.mxu2 %v830_v55  ;;  %953 = vmatpush.msrb.mxu1 %v809_v22 }
 0x176   :  { %990 = vmatpush.msrb.mxu3 %v850_v53  ;;  %1011 = vmatpush.msrb.mxu0 %v868_v62 }
 0x177   :  { %972 = vmatpush.msrb.mxu2 %v829_v56  ;;  %954 = vmatpush.msrb.mxu1 %v808_v26 }
 0x178   :  { %991 = vmatpush.msrb.mxu3 %v849_v14  ;;  %1012 = vmatpush.msrb.mxu0 %v867_v15 }
 0x179   :  { %973 = vmatpush.msrb.mxu2 %v828_v59  ;;  %955 = vmatpush.msrb.mxu1 %v807_v29 }
 0x17a   :  { %992 = vmatpush.msrb.mxu3 %v848_v54  ;;  %1013 = vmatpush.msrb.mxu0 %v866_v20 }
 0x17b   :  { %974 = vmatpush.msrb.mxu2 %v827_v12 }
 0x17c   :  { %993 = vmatpush.msrb.mxu3 %v847_v5  ;;  %1014 = vmatpush.msrb.mxu0 %v865_v3 }
 0x17d   :  { %975 = vmatpush.msrb.mxu2 %v826_v2 }
 0x17e   :  { %994 = vmatpush.msrb.mxu3 %v846_v57  ;;  %1015 = vmatpush.msrb.mxu0 %v864_v25 }
 0x17f   :  { %976 = vmatpush.msrb.mxu2 %v825_v16 }
 0x180   :  { %995 = vmatpush.msrb.mxu3 %v845_v60  ;;  %1016 = vmatpush.msrb.mxu0 %v863_v28 }
 0x181   :  { %977 = vmatpush.msrb.mxu2 %v824_v19 }
 0x182   :  { %996 = vmatpush.msrb.mxu3 %v844_v11  ;;  %1017 = vmatpush.msrb.mxu0 %v862_v30 }
 0x183   :  { %978 = vmatpush.msrb.mxu2 %v823_v23 }
 0x184   :  { %997 = vmatpush.msrb.mxu3 %v843_v13  ;;  %1018 = vmatpush.msrb.mxu0 %v861_v31 }
 0x186   :  { %998 = vmatpush.msrb.mxu3 %v842_v17  ;;  %1019 = vmatpush.msrb.mxu0 %v860_v34 }
 0x188   :  { %999 = vmatpush.msrb.mxu3 %v841_v21  ;;  %1020 = vmatpush.msrb.mxu0 %v859_v1 }
 0x18a   :  { %1000 = vmatpush.msrb.mxu3 %v840_v24  ;;  %1021 = vmatpush.msrb.mxu0 %v858_v32 }
 0x18c   :  { %1001 = vmatpush.msrb.mxu3 %v839_v27  ;;  %1022 = vmatpush.msrb.mxu0 %v857_v33 }
 0x18e   :  { %1023 = vmatpush.msrb.mxu0 %v856_v35 }
 0x190   :  { %1024 = vmatpush.msrb.mxu0 %v855_v37 }
 0x1c2   :  { %v638_v36 = vpop.f32.mrf.mxu1 }
 0x1c3   :  { %910 = vmatmul.f32.vlgmr.msra.gmra.mxu3 %v638_v36 }
 0x1c4   :  { %v730_v40 = vpop.f32.mrf.mxu0 }
 0x1c9   :  { %v707_v38 = vpop.f32.mrf.mxu3 }
 0x1ca   :  { %v641_v39 = vpop.f32.mrf.mxu1  ;;  %979 = vmatmul.f32.vlgmr.msrb.gmra.mxu2 %v707_v38 }
 0x1cb   :  { %913 = vmatmul.f32.gmra.mxu3 %v641_v39  ;;  %v684_v0 = vpop.f32.mrf.mxu2 }
 0x1cc   :  { %956 = vmatmul.f32.vlgmr.msrb.gmra.mxu1 %v684_v0  ;;  %v733_v43 = vpop.f32.mrf.mxu0 }
 0x1d1   :  { %v710_v41 = vpop.f32.mrf.mxu3 }
 0x1d2   :  { %v661_v42 = vpop.f32.mrf.mxu1  ;;  %982 = vmatmul.f32.gmra.mxu2 %v710_v41 }
 0x1d3   :  { %933 = vmatmul.f32.vlgmr.msra.gmra.mxu0 %v661_v42  ;;  %1002 = vmatmul.f32.vlgmr.msrb.gmra.mxu3 %v730_v40  ;;  %v687_v50 = vpop.f32.mrf.mxu2 }
 0x1d4   :  { %959 = vmatmul.f32.gmra.mxu1 %v687_v50 }
 0x1da   :  { %v664_v44 = vpop.f32.mrf.mxu1 }
 0x1db   :  { %936 = vmatmul.f32.gmra.mxu0 %v664_v44  ;;  %1005 = vmatmul.f32.gmra.mxu3 %v733_v43 }
 0x1e2   :  { %v753_v45 = vpop.f32.mrf.mxu1 }
 0x1e3   :  { %1025 = vmatmul.f32.vlgmr.msrb.gmra.mxu0 %v753_v45 }
 0x1e7   :  { %v888_v47 = vpop.f32.mrf.mxu2 }
 0x1ea   :  { %v756_v46 = vpop.f32.mrf.mxu1 }
 0x1eb   :  { %1028 = vmatmul.f32.gmra.mxu0 %v756_v46 }
 0x1ef   :  { %v891_v51 = vpop.f32.mrf.mxu2 }
 0x246   :  { %v911_v49 = vpop.f32.mrf.mxu3 }
 0x247   :  { %v912_v53 = vadd.f32 %v911_v49, %v888_v47 }
 0x249   :  { %v957_v14 = vpop.f32.mrf.mxu1 }
 0x24d   :  { %v980_v4 = vpop.f32.mrf.mxu2 }
 0x24e   :  { %v914_v52 = vpop.f32.mrf.mxu3 }
 0x24f   :  { %v915_v8 = vadd.f32 %v914_v52, %v891_v51 }
 0x250   :  { %v934_v48 = vpop.f32.mrf.mxu0 }
 0x251   :  { %v935_v54 = vadd.f32 %v934_v48, %v912_v53  ;;  %v960_v58 = vpop.f32.mrf.mxu1 }
 0x253   :  { %v958_v55 = vadd.f32 %v957_v14, %v935_v54 }
 0x255   :  { %v981_v56 = vadd.f32 %v980_v4, %v958_v55  ;;  %v983_v60 = vpop.f32.mrf.mxu2 }
 0x256   :  { %v1003_v7 = vpop.f32.mrf.mxu3 }
 0x257   :  { %v1004_v9 = vadd.f32 %v1003_v7, %v981_v56 }
 0x258   :  { %v937_v5 = vpop.f32.mrf.mxu0 }
 0x259   :  { %v938_v57 = vadd.f32 %v937_v5, %v915_v8 }
 0x25b   :  { %v961_v59 = vadd.f32 %v960_v58, %v938_v57 }
 0x25d   :  { %v984_v12 = vadd.f32 %v983_v60, %v961_v59 }
 0x25e   :  { %v1006_v62 = vpop.f32.mrf.mxu3 }
 0x25f   :  { %v1007_v63 = vadd.f32 %v1006_v62, %v984_v12 }
 0x260   :  { %v1026_v10 = vpop.f32.mrf.mxu0 }
 0x261   :  { %v1027_v61 = vadd.f32 %v1026_v10, %v1004_v9 }
 0x263   :  { %v1032_v11 = vmax.f32 %v1027_v61, 0.0 }
 0x265   :  { %1034 = vst [vmem:[#allocation10] sm:$0xff] %v1032_v11 }
 0x268   :  { %v1029_v2 = vpop.f32.mrf.mxu0 }
 0x269   :  { %v1030_v13 = vadd.f32 %v1029_v2, %v1007_v63 }
 0x26b   :  { %v1033_v15 = vmax.f32 %v1030_v13, 0.0 }
 0x26d   :  { %1035 = vst [vmem:[#allocation10 + $0x8] sm:$0xff] %v1033_v15 }
 0x26e   :  { %1048 = dma.vmem_to_hbm [thread:$0]  %s1041_s8, 256, %s1043_s11, [#allocation4], %s1234_s23, %s1234_s23, %s1235_s24  }
 0x26f   :  { %1231 = dma.done.wait [#allocation4], 256  }
 0x270   :  { %1232 = vsyncadd [#allocation4], 4294967040 }
 0x271   :  { %1053 = vsyncpa [#allocation3], 1 }
 0x272   :  { %1054 = vsyncpa [#allocation6], 1 }
 0x273   :  { %1055 = vsyncpa [#allocation9], 1 }
 0x274   :  { %1056 = vsyncpa [#allocation4], 1 }

</bundles_post_ra>
